<compile_context>
chip_gen: v7x
topology: tpu7x:2x2x1
jax: 0.10.0
libtpu: 0.0.40
codegen_flags: <defaults>
</compile_context>

<pallas_src>
import functools

import jax
import jax.numpy as jnp
from jax.experimental import pallas as pl
from jax.experimental.pallas import tpu as pltpu


def _round_up(x, m):
    return (x + m - 1) // m * m


def _num_tensorcores():
    """Best-effort TensorCores-per-device (2 on megacore v4/v5p and on v7x)."""
    try:
        kind = jax.devices()[0].device_kind.lower()
    except Exception:
        return 1
    if any(tag in kind for tag in ("v4", "v5p", "v7")):
        return 2
    return 1


def _vmem_capacity_bytes():
    try:
        return int(pltpu.get_tpu_info().vmem_capacity_bytes)
    except Exception:
        return 64 << 20  # conservative (v7x) fallback


def _pick_chunk(p3p, nr8, vb, vmem_budget):
    """Voxels per grid step: as large as ~1/3 of the VMEM budget allows, <= 32768."""
    # Per voxel column the in-kernel temporaries are dominated by the bin one-hot path
    # over (p3p, chunk): i32 iota + bool compare + bf16 cast (~8 B/cell), plus the same
    # for the (nr8, chunk) region one-hot, plus the double-buffered input blocks.
    per_col = 8 * (p3p + nr8) + 2 * (3 * 4 + 4)
    chunk = (vmem_budget // 3) // per_col
    chunk = max(128, min(32768, (chunk // 128) * 128))
    if vb >= 128:                       # never ask for a block wider than the data
        chunk = min(chunk, (vb // 128) * 128)
    return chunk


def _hist_kernel(g_ref, seg_ref, out_ref, acc_ref, *,
                 patch_size, eps, nr8, p3p, vb, masked):
    b = pl.program_id(1)
    s = pl.program_id(2)

    @pl.when(jnp.logical_and(b == 0, s == 0))
    def _():
        acc_ref[...] = jnp.zeros_like(acc_ref)

    p = patch_size
    chunk = g_ref.shape[-1]

    g = g_ref[...].astype(jnp.float32)              # (3, chunk), voxels on lanes
    seg = seg_ref[...]                              # (1, chunk) int32

    # clip -> affine -> truncate.  Values are non-negative so int cast == floor.
    gc = jnp.clip(g, eps - 1.0, 1.0 - eps)
    idx = ((gc + 1.0) * jnp.float32(0.5 * p)).astype(jnp.int32)   # (3, chunk) in [0,p)
    loc = idx[0:1] * (p * p) + idx[1:2] * p + idx[2:3]            # (1, chunk) local bin

    # Region one-hot (nr8, chunk): regions on sublanes, voxels on lanes.  Built in its
    # final orientation and dtype with a single compare -> bf16 cast (no transpose).
    reg_iota = jax.lax.broadcasted_iota(jnp.int32, (nr8, chunk), 0)
    seg_hit = reg_iota == seg
    if masked:  # ragged tail / duplicated clamped block: zero out-of-range voxels
        vstart = (pl.program_id(0) * pl.num_programs(2) + s) * chunk
        lane = jax.lax.broadcasted_iota(jnp.int32, (1, chunk), 1)
        seg_hit = jnp.logical_and(seg_hit, vstart + lane < vb)
    seg_oh = seg_hit.astype(jnp.bfloat16)           # (nr8, chunk)

    # Bin one-hot (p3p, chunk): bins on sublanes, voxels on lanes.
    bin_iota = jax.lax.broadcasted_iota(jnp.int32, (p3p, chunk), 0)
    bin_oh = (bin_iota == loc).astype(jnp.bfloat16)  # (p3p, chunk)

    # Scatter-add realized on the MXU, contracting the voxel axis of both one-hots:
    #   acc[r, bin] += sum_v seg_oh[r, v] * bin_oh[bin, v]
    # (0/1 is exact in bf16; f32 accumulation.)
    acc_ref[...] += jax.lax.dot_general(
        seg_oh, bin_oh, (((1,), (1,)), ((), ())),
        preferred_element_type=jnp.float32)

    @pl.when(jnp.logical_and(b == pl.num_programs(1) - 1,
                             s == pl.num_programs(2) - 1))
    def _():
        out_ref[...] = acc_ref[...]


def gradient_histogram_extractor(grad, seg, coord, bbox, num_regions, *,
                                 patch_size, eps=1e-7, sizes=None, chunk=None):
    """Pallas implementation of GradientHistogramExtractor.forward.

    grad: [B, 3, T, H, W] float (values roughly in [-1, 1])
    seg:  [B, T, H, W] int labels in [0, num_regions)
    coord, bbox: accepted for signature fidelity (unused by the PyTorch forward).
    Returns [num_regions, 1, patch_size, patch_size, patch_size] float32.
    """
    del coord, bbox  # unused in the reference forward as well
    B, C, T, H, W = grad.shape
    assert C == 3
    vb = T * H * W                                   # voxels per batch element
    p3 = patch_size ** 3
    p3p = _round_up(p3, 128)                         # bins -> lanes
    nr8 = _round_up(max(num_regions, 1), 8)          # regions -> sublanes

    vmem_cap = _vmem_capacity_bytes()
    vmem_limit = int(min(max(vmem_cap * 3 // 4, 32 << 20), 100 << 20))

    if chunk is None:
        chunk = _pick_chunk(p3p, nr8, vb, vmem_limit)
    chunk = max(128, (chunk // 128) * 128)

    nblocks = pl.cdiv(vb, chunk)
    ncores = max(1, min(_num_tensorcores(), nblocks))
    nsteps = pl.cdiv(nblocks, ncores)
    full_tiles = (vb % chunk == 0) and (nblocks == ncores * nsteps)

    # Free reshapes of the native layouts: no HBM transpose or pad passes.
    g3 = grad.reshape(B, 3, vb)
    s3 = seg.reshape(B, 1, vb).astype(jnp.int32)

    kernel = functools.partial(_hist_kernel, patch_size=patch_size, eps=float(eps),
                               nr8=nr8, p3p=p3p, vb=vb, masked=not full_tiles)

    def vox_block(c, b, s):
        # Clamp so an odd block count split across cores never DMAs out of bounds;
        # the duplicated block is fully masked out inside the kernel.
        return (b, 0, jnp.minimum(c * nsteps + s, nblocks - 1))

    counts_t = pl.pallas_call(
        kernel,
        out_shape=jax.ShapeDtypeStruct((ncores * nr8, p3p), jnp.float32),
        grid_spec=pltpu.PrefetchScalarGridSpec(
            num_scalar_prefetch=0,
            grid=(ncores, B, nsteps),
            in_specs=[
                pl.BlockSpec((pl.Squeezed(), 3, chunk), vox_block),   # grad (3, chunk)
                pl.BlockSpec((pl.Squeezed(), 1, chunk), vox_block),   # seg  (1, chunk)
            ],
            out_specs=pl.BlockSpec((nr8, p3p), lambda c, b, s: (c, 0)),
            scratch_shapes=[pltpu.VMEM((nr8, p3p), jnp.float32)],
        ),
        compiler_params=pltpu.CompilerParams(
            dimension_semantics=("parallel", "arbitrary", "arbitrary"),
            vmem_limit_bytes=vmem_limit),
    )(g3, s3)

    # Sum per-core partials, drop region/bin padding.  Already (regions, bins).
    counts = counts_t.reshape(ncores, nr8, p3p).sum(axis=0)[:num_regions, :p3]

    if sizes is None:
        # Every real voxel contributes exactly one count -> row sums == bincount(seg).
        sizes = counts.sum(axis=1)
    den = sizes.astype(jnp.float32) * (patch_size / 32.0) ** 2
    return (counts.reshape(num_regions, 1, patch_size, patch_size, patch_size)
            / den.reshape(-1, 1, 1, 1, 1))


def _reference_forward(grad, seg, num_regions, patch_size, eps=1e-7, sizes=None):
    """Pure-JAX port of the PyTorch forward, for correctness checking."""
    if sizes is None:
        sizes = jnp.bincount(seg.reshape(-1), length=num_regions)
    g = jnp.clip(grad.astype(jnp.float32), eps - 1.0, 1.0 - eps)
    g = (jnp.transpose(g, (1, 0, 2, 3, 4)).reshape(3, -1) + 1.0) * (patch_size * 0.5)
    g = jnp.floor(g).astype(jnp.int32)
    gy, gx, gz = g[0], g[1], g[2]
    pos = (seg.reshape(-1).astype(jnp.int32) * patch_size ** 3
           + gy * patch_size ** 2 + gx * patch_size + gz)
    hist = jnp.zeros(num_regions * patch_size ** 3, jnp.float32).at[pos].add(1.0)
    den = sizes.astype(jnp.float32) * (patch_size / 32.0) ** 2
    return (hist.reshape(num_regions, 1, patch_size, patch_size, patch_size)
            / den.reshape(-1, 1, 1, 1, 1))


if __name__ == "__main__":
    key = jax.random.PRNGKey(0)
    k_grad, k_seg = jax.random.split(key)

    # Small shapes; W=10 makes T*H*W=320 non-divisible by the 128-aligned chunk so the
    # in-kernel ragged-tail mask and multi-step accumulation paths are both exercised.
    B, T, H, W = 2, 4, 8, 10
    num_regions = 5
    patch_size = 4

    grad = jax.random.uniform(k_grad, (B, 3, T, H, W),
                              minval=-1.0, maxval=1.0, dtype=jnp.float32)
    seg = jax.random.randint(k_seg, (B, T, H, W), 0, num_regions, dtype=jnp.int32)
    # coord / bbox are unused by the forward but part of the interface.
    coord = jnp.zeros((4, B * T * H * W), jnp.int32)
    bbox = jnp.zeros((6, num_regions), jnp.int32)

    out = gradient_histogram_extractor(grad, seg, coord, bbox, num_regions,
                                       patch_size=patch_size)
    out = jax.block_until_ready(out)

    ref = _reference_forward(grad, seg, num_regions, patch_size)
    assert out.shape == (num_regions, 1, patch_size, patch_size, patch_size)
    assert jnp.allclose(out, ref, atol=1e-5, rtol=1e-5), "mismatch vs reference"

    print("KERNEL_OK")
</pallas_src>

<mosaic_0001>
module attributes {stable_mosaic.version = 11 : i64} {
  func.func @_hist_kernel(%arg0: i32, %arg1: i32, %arg2: i32, %arg3: memref<1x3x256xf32, #tpu.memory_space<vmem>>, %arg4: memref<1x1x256xi32, #tpu.memory_space<vmem>>, %arg5: memref<8x128xf32, #tpu.memory_space<vmem>>, %arg6: memref<8x128xf32, #tpu.memory_space<vmem>>) attributes {dimension_semantics = [#tpu.dimension_semantics<parallel>, #tpu.dimension_semantics<arbitrary>, #tpu.dimension_semantics<arbitrary>], iteration_bounds = array<i64: 1, 2, 2>, scalar_prefetch = 0 : i64, scratch_operands = 1 : i64, tpu.core_type = #tpu.core_type<tc>, window_params = [{transform_indices = @transform_0, window_bounds = array<i64: 1, 3, 256>}, {transform_indices = @transform_1, window_bounds = array<i64: 1, 1, 256>}, {transform_indices = @transform_2, window_bounds = array<i64: 8, 128>}]} {
    %c0_i32 = arith.constant 0 : i32
    %0 = arith.cmpi eq, %arg1, %c0_i32 : i32
    %c0_i32_0 = arith.constant 0 : i32
    %1 = arith.cmpi eq, %arg2, %c0_i32_0 : i32
    %2 = arith.andi %0, %1 : i1
    %3 = arith.extui %2 : i1 to i32
    %c0_i32_1 = arith.constant 0 : i32
    %4 = arith.cmpi ne, %3, %c0_i32_1 : i32
    scf.if %4 {
      %cst_17 = arith.constant 0.000000e+00 : f32
      %58 = vector.broadcast %cst_17 : f32 to vector<8x128xf32>
      %c0_18 = arith.constant 0 : index
      %c0_19 = arith.constant 0 : index
      %59 = vector.load %arg6[%c0_18, %c0_19] : memref<8x128xf32, #tpu.memory_space<vmem>>, vector<8x128xf32>
      tpu.vector_store %arg6[%c0_18, %c0_19], %58 {strides = array<i32>} : memref<8x128xf32, #tpu.memory_space<vmem>>, vector<8x128xf32>,
    } else {
    }
    %c0 = arith.constant 0 : index
    %c0_2 = arith.constant 0 : index
    %c0_3 = arith.constant 0 : index
    %5 = vector.load %arg3[%c0, %c0_2, %c0_3] : memref<1x3x256xf32, #tpu.memory_space<vmem>>, vector<1x3x256xf32>
    %6 = vector.shape_cast %5 : vector<1x3x256xf32> to vector<3x256xf32>
    %c0_4 = arith.constant 0 : index
    %c0_5 = arith.constant 0 : index
    %c0_6 = arith.constant 0 : index
    %7 = vector.load %arg4[%c0_4, %c0_5, %c0_6] : memref<1x1x256xi32, #tpu.memory_space<vmem>>, vector<1x1x256xi32>
    %8 = vector.shape_cast %7 : vector<1x1x256xi32> to vector<1x256xi32>
    %cst = arith.constant -0.99999988 : f32
    %cst_7 = arith.constant 0.99999988 : f32
    %9 = vector.broadcast %cst : f32 to vector<3x256xf32>
    %10 = arith.maximumf %9, %6 : vector<3x256xf32>
    %11 = vector.broadcast %cst_7 : f32 to vector<3x256xf32>
    %12 = arith.minimumf %11, %10 : vector<3x256xf32>
    %cst_8 = arith.constant 1.000000e+00 : f32
    %13 = vector.broadcast %cst_8 : f32 to vector<3x256xf32>
    %14 = arith.addf %12, %13 : vector<3x256xf32>
    %cst_9 = arith.constant 2.000000e+00 : f32
    %15 = vector.broadcast %cst_9 : f32 to vector<3x256xf32>
    %16 = arith.mulf %14, %15 : vector<3x256xf32>
    %17 = arith.fptosi %16 : vector<3x256xf32> to vector<3x256xi32>
    %18 = vector.extract_strided_slice %17 {offsets = [0, 0], sizes = [1, 256], strides = [1, 1]} : vector<3x256xi32> to vector<1x256xi32>
    %c16_i32 = arith.constant 16 : i32
    %19 = vector.broadcast %c16_i32 : i32 to vector<1x256xi32>
    %20 = arith.muli %18, %19 : vector<1x256xi32>
    %21 = vector.extract_strided_slice %17 {offsets = [1, 0], sizes = [1, 256], strides = [1, 1]} : vector<3x256xi32> to vector<1x256xi32>
    %c4_i32 = arith.constant 4 : i32
    %22 = vector.broadcast %c4_i32 : i32 to vector<1x256xi32>
    %23 = arith.muli %21, %22 : vector<1x256xi32>
    %24 = arith.addi %20, %23 : vector<1x256xi32>
    %25 = vector.extract_strided_slice %17 {offsets = [2, 0], sizes = [1, 256], strides = [1, 1]} : vector<3x256xi32> to vector<1x256xi32>
    %26 = arith.addi %24, %25 : vector<1x256xi32>
    %27 = tpu.iota {dimensions = array<i32: 0>} : vector<8x256xi32>
    %28 = vector.broadcast %8 : vector<1x256xi32> to vector<8x256xi32>
    %29 = arith.cmpi eq, %27, %28 : vector<8x256xi32>
    %c2_i32 = arith.constant 2 : i32
    %30 = arith.muli %arg0, %c2_i32 : i32
    %31 = arith.addi %30, %arg2 : i32
    %c256_i32 = arith.constant 256 : i32
    %32 = arith.muli %31, %c256_i32 : i32
    %33 = tpu.iota {dimensions = array<i32: 1>} : vector<1x256xi32>
    %34 = vector.broadcast %32 : i32 to vector<1x256xi32>
    %35 = arith.addi %34, %33 : vector<1x256xi32>
    %c320_i32 = arith.constant 320 : i32
    %36 = vector.broadcast %c320_i32 : i32 to vector<1x256xi32>
    %37 = arith.cmpi slt, %35, %36 : vector<1x256xi32>
    %38 = vector.broadcast %37 : vector<1x256xi1> to vector<8x256xi1>
    %39 = arith.andi %29, %38 : vector<8x256xi1>
    %40 = arith.extui %39 : vector<8x256xi1> to vector<8x256xi32>
    %41 = arith.sitofp %40 : vector<8x256xi32> to vector<8x256xf32>
    %42 = arith.truncf %41 : vector<8x256xf32> to vector<8x256xbf16>
    %43 = tpu.iota {dimensions = array<i32: 0>} : vector<128x256xi32>
    %44 = vector.broadcast %26 : vector<1x256xi32> to vector<128x256xi32>
    %45 = arith.cmpi eq, %43, %44 : vector<128x256xi32>
    %46 = arith.extui %45 : vector<128x256xi1> to vector<128x256xi32>
    %47 = arith.sitofp %46 : vector<128x256xi32> to vector<128x256xf32>
    %48 = arith.truncf %47 : vector<128x256xf32> to vector<128x256xbf16>
    %c0_10 = arith.constant 0 : index
    %c0_11 = arith.constant 0 : index
    %49 = vector.load %arg6[%c0_10, %c0_11] : memref<8x128xf32, #tpu.memory_space<vmem>>, vector<8x128xf32>
    %cst_12 = arith.constant dense<0.000000e+00> : vector<8x128xf32>
    %50 = tpu.matmul %42, %48, %cst_12 {dimension_numbers = #tpu.dot_dimension_numbers<[1], [1], [0], [0], [0, 0, 1, 0], [], []>} : vector<8x256xbf16>, vector<128x256xbf16>, vector<8x128xf32> -> vector<8x128xf32>
    %51 = arith.addf %49, %50 : vector<8x128xf32>
    %c0_13 = arith.constant 0 : index
    %c0_14 = arith.constant 0 : index
    %52 = vector.load %arg6[%c0_13, %c0_14] : memref<8x128xf32, #tpu.memory_space<vmem>>, vector<8x128xf32>
    tpu.vector_store %arg6[%c0_13, %c0_14], %51 {strides = array<i32>} : memref<8x128xf32, #tpu.memory_space<vmem>>, vector<8x128xf32>,
    %c1_i32 = arith.constant 1 : i32
    %53 = arith.cmpi eq, %arg1, %c1_i32 : i32
    %c1_i32_15 = arith.constant 1 : i32
    %54 = arith.cmpi eq, %arg2, %c1_i32_15 : i32
    %55 = arith.andi %53, %54 : i1
    %56 = arith.extui %55 : i1 to i32
    %c0_i32_16 = arith.constant 0 : i32
    %57 = arith.cmpi ne, %56, %c0_i32_16 : i32
    scf.if %57 {
      %c0_17 = arith.constant 0 : index
      %c0_18 = arith.constant 0 : index
      %58 = vector.load %arg6[%c0_17, %c0_18] : memref<8x128xf32, #tpu.memory_space<vmem>>, vector<8x128xf32>
      %c0_19 = arith.constant 0 : index
      %c0_20 = arith.constant 0 : index
      %59 = vector.load %arg5[%c0_19, %c0_20] : memref<8x128xf32, #tpu.memory_space<vmem>>, vector<8x128xf32>
      tpu.vector_store %arg5[%c0_19, %c0_20], %58 {strides = array<i32>} : memref<8x128xf32, #tpu.memory_space<vmem>>, vector<8x128xf32>,
    } else {
    }
    return
  }
  func.func @transform_0(%arg0: i32, %arg1: i32, %arg2: i32) -> (i32, i32, i32) {
    %c2_i32 = arith.constant 2 : i32
    %0 = arith.muli %arg0, %c2_i32 : i32
    %1 = arith.addi %0, %arg2 : i32
    %c1_i32 = arith.constant 1 : i32
    %2 = arith.minsi %1, %c1_i32 : i32
    %c0_i32 = arith.constant 0 : i32
    %c0_i32_0 = arith.constant 0 : i32
    return %arg1, %c0_i32, %2 : i32, i32, i32
  }
  func.func @transform_1(%arg0: i32, %arg1: i32, %arg2: i32) -> (i32, i32, i32) {
    %c2_i32 = arith.constant 2 : i32
    %0 = arith.muli %arg0, %c2_i32 : i32
    %1 = arith.addi %0, %arg2 : i32
    %c1_i32 = arith.constant 1 : i32
    %2 = arith.minsi %1, %c1_i32 : i32
    %c0_i32 = arith.constant 0 : i32
    %c0_i32_0 = arith.constant 0 : i32
    return %arg1, %c0_i32, %2 : i32, i32, i32
  }
  func.func @transform_2(%arg0: i32, %arg1: i32, %arg2: i32) -> (i32, i32) {
    %c0_i32 = arith.constant 0 : i32
    %c0_i32_0 = arith.constant 0 : i32
    return %arg0, %c0_i32 : i32, i32
  }
}

</mosaic_0001>

<bundles_post_ra>
// kernel: tpu_custom_call.1
= control target key start
LH: loop header
LB: loop body
LE: loop exit
PB: predicated region body
PF: predicated region fallthrough
CT: control target
= control target key end

     0   :  { %7 = vsyncpa [#allocation4], 0  ;;  %s862_s9 = smov 0   ;;  %s864_s10 = smov 0   ;;  %s1040_s0 = inlined_call_operand.vmem [shape: f32[2,3,320], index: 0, kind: input, shape index: {}]   ;;  %s1041_s1 = inlined_call_operand.vmem [shape: s32[2,1,320], index: 1, kind: input, shape index: {}]   ;;  %s1042_s2 = inlined_call_operand.hbm [shape: f32[8,128], index: 2, kind: output, shape index: {}]  }
   0x1   :  { %s866_s11 = smov 0   ;;  %s868_s12 = smov 0  }
   0x2   :  { %s870_s13 = smov 0  }
   0x3 LB: > { %s637_s14 = sadd.s32 4294967295, %s842_s13   ;;  %s25_s15 = sadd.s32 1, %s834_s11  ;;  %s842_s13 = sphi %s870_s13, %s13_s13   ;;  %s838_s12 = sphi %s868_s12, %s1049_s12   ;;  %s834_s11 = sphi %s866_s11, %s1048_s11   ;;  %s830_s10 = sphi %s864_s10, %s1047_s10   ;;  %s826_s9 = sphi %s862_s9, %s1046_s9  }
   0x4   : > { %p26_p0 = scmp.ge.s32.totalorder %s25_s15, 2  ;;  %s28_s16 = sadd.s32 1, %s838_s12 }
   0x5   : > { %p640_p1 = scmp.ge.s32.totalorder %s842_s13, 1  ;;  %p203_p2 = scmp.lt.s32.totalorder %s842_s13, 5 }
   0x6   : > { %s1051_s15 = smov (%p26_p0, %s25_s15), 0  ;;  %s1053_s16 = smov (!%p26_p0, %s28_s16), %s838_s12 }
   0x7   : > { %p204_p3 = pnand %p640_p1, %p203_p2  ;;  %p30_p4 = scmp.ge.s32.totalorder %s1053_s16, 2 }
   0x8   : > { %p250_p5 = scmp.lt.s32.totalorder (!%p204_p3), %s826_s9, 1  ;;  %p257_p6 = scmp.lt.s32.totalorder (!%p204_p3), %s830_s10, 1 }
   0x9   : > { %s1055_s16 = smov (%p30_p4, %s1053_s16), 0  ;;  %207 = sbr.rel (%p204_p3) target bundleno = 362 (0x16a), region = 28 }
   0xa   : > { %p300_p7 = scmp.eq.s32.totalorder (!%p204_p3), %s830_s10, 0  ;;  %p301_p8 = scmp.eq.s32.totalorder (!%p204_p3), %s826_s9, 0 }
   0xc   : > { %p302_p9 = pnand (!%p204_p3), %p301_p8, %p300_p7 }
  0x10   : > { %s251_s17 = scalar_select %p250_p5, %s826_s9, 1 }
  0x11   : > { %s258_s18 = scalar_select %p257_p6, %s830_s10, 1 }
  0x12   : > { %s641_s19 = sshll.u32 %s251_s17, 1  ;;  %305 = sbr.rel (%p302_p9) target bundleno = 25 (0x19), region = 32  ;;  %v844_v0 = vmov (!%p302_p9), 0.0  }
  0x13   : > { %p259_p10 = scmp.lt.s32.totalorder %s641_s19, 2  ;;  %s722_s20 = smul.u32 3, %s258_s18  ;;  %306 = vst [vmem:[#allocation2] sm:$0xff] (!%p302_p9), %v844_v0 }
  0x15   : > { %s1057_s19 = smov (!%p259_p10, %s641_s19), 2 }
  0x16   : > { %s262_s21 = sadd.s32 %s722_s20, %s1057_s19 }
  0x17   : > { %s642_s22 = sshll.u32 %s262_s21, 2  ;;  %s289_s25 = scalar_lea.vmem %s1041_s1, %s262_s21 }
  0x18   : > { %s264_s28 = scalar_lea.vmem %s1040_s0, %s642_s22 }
  0x19 PF: > { %v307_v1 = vld [vmem:[%s264_s28] sm:$0x77]  ;;  %v322_v2 = vlaneseq  ;;  %s647_s29 = sshll.u32 %s826_s9, 8  ;;  %v845_v27 = vmov 1.0|1.0   ;;  %p543_p11 = scmp.eq.s32.totalorder %s830_s10, 1 }
  0x1a   : > { %v644_v3 = vclamps-f32 %v307_v1, 0.9999999  ;;  %v308_v7 = vld [vmem:[%s289_s25] sm:$0x3]  ;;  %v340_v10 = vstv %s647_s29  ;;  %p544_p12 = scmp.eq.s32.totalorder %s826_s9, 1 }
  0x1b   : > { %v909_v4 = vshrl.u32 %v322_v2, 7  ;;  %v338_v8 = vand.u32 127, %v322_v2  ;;  %v500_v47 = vld [vmem:[#allocation2] sm:$0xff] }
  0x1c   : > { %v311_v5 = vadd.f32 1.0, %v644_v3  ;;  %p545_p13 = pnand %p544_p12, %p543_p11 }
  0x1d   : > { %v326_v9 = vsub.s32 0, %v909_v4  ;;  %v330_v14 = vsub.s32 1, %v909_v4  ;;  %v339_v15 = vadd.s32 128, %v338_v8  ;;  %v341_v16 = vadd.s32 %v340_v10, %v338_v8 }
  0x1e   : > { %v312_v6 = vmul.f32 2.0, %v311_v5  ;;  %v378_v25 = vsub.s32 4, %v909_v4  ;;  %v357_v28 = vadd.s32 8, %v909_v4  ;;  %v358_v31 = vadd.s32 16, %v909_v4 }
  0x1f   : > { %v327_v12 = vrot.slane %v308_v7, %v326_v9  ;;  %v331_v19 = vrot.slane %v308_v7, %v330_v14  ;;  %v342_v20 = vadd.s32 %v340_v10, %v339_v15  ;;  %vm343_vm1 = vcmp.lt.s32.totalorder %v341_v16, 320 }
  0x20   : > { %v723_v11 = vtrunc.f32 %v312_v6  ;;  %v359_v32 = vadd.s32 24, %v909_v4  ;;  %v360_v35 = vadd.s32 32, %v909_v4  ;;  %v361_v36 = vadd.s32 40, %v909_v4 }
  0x21   : > { %vm332_vm0 = vcmp.eq.s32.totalorder %v909_v4, %v327_v12  ;;  %vm333_vm2 = vcmp.eq.s32.totalorder %v909_v4, %v331_v19  ;;  %vm344_vm4 = vcmp.lt.s32.totalorder %v342_v20, 320  ;;  %v362_v37 = vadd.s32 48, %v909_v4 }
  0x22   : > { %v724_v13 = vcvt.f32.s32 %v723_v11  ;;  %vm916_vm3 = vmand %vm332_vm0, %vm343_vm1  ;;  %v363_v38 = vadd.s32 56, %v909_v4  ;;  %v364_v39 = vadd.s32 64, %v909_v4  ;;  %v365_v40 = vadd.s32 72, %v909_v4 }
  0x23   : > { %vm350_vm5 = vmand %vm333_vm2, %vm344_vm4  ;;  %v366_v41 = vadd.s32 80, %v909_v4  ;;  %v367_v42 = vadd.s32 88, %v909_v4  ;;  %v368_v43 = vadd.s32 96, %v909_v4  ;;  %v369_v44 = vadd.s32 104, %v909_v4 }
  0x24   : > { %v314_v17 = vmul.u32 16, %v724_v13  ;;  %v315_v18 = vmul.u32 4, %v724_v13  ;;  %v646_v22 = vrot.slane %v724_v13, 10  ;;  %vm714_vm6 = vmpackc.low %vm350_vm5, %vm350_vm5  ;;  %v370_v45 = vadd.s32 112, %v909_v4 }
  0x25   : > { %715 = vmatprep.mubr.msk.bf16.mxu0 %vm714_vm6, %v845_v27  ;;  %v371_v46 = vadd.s32 120, %v909_v4 }
  0x26   : > { %v645_v21 = vrot.slane %v315_v18, 9 }
  0x28   : > { %v318_v24 = vadd.s32 %v645_v21, %v314_v17 }
  0x2a   : > { %v321_v26 = vadd.s32 %v646_v22, %v318_v24 }
  0x2c   : > { %v379_v29 = vrot.slane %v321_v26, %v378_v25  ;;  %v375_v30 = vrot.slane %v321_v26, %v326_v9 }
  0x2e   : > { %v925_v33 = vrot.slane %v379_v29, %v326_v9  ;;  %v927_v34 = vrot.slane %v375_v30, %v326_v9 }
  0x30   : > { %vm389_vm7 = vcmp.eq.s32.totalorder %v909_v4, %v925_v33  ;;  %vm391_vm8 = vcmp.eq.s32.totalorder %v357_v28, %v925_v33  ;;  %vm388_vm9 = vcmp.eq.s32.totalorder %v909_v4, %v927_v34  ;;  %vm390_vm10 = vcmp.eq.s32.totalorder %v357_v28, %v927_v34 }
  0x31   : > { %vm682_vm11 = vmpackc.low %vm391_vm8, %vm389_vm7  ;;  %vm393_vm12 = vcmp.eq.s32.totalorder %v358_v31, %v925_v33  ;;  %vm395_vm13 = vcmp.eq.s32.totalorder %v359_v32, %v925_v33  ;;  %vm392_vm0 = vcmp.eq.s32.totalorder %v358_v31, %v927_v34  ;;  %vm394_vm1 = vcmp.eq.s32.totalorder %v359_v32, %v927_v34 }
  0x32   : > { %683 = vmatprep.subr.msk.bf16.mxu0 %vm682_vm11, %v845_v27  ;;  %vm684_vm14 = vmpackc.low %vm390_vm10, %vm388_vm9  ;;  %vm397_vm2 = vcmp.eq.s32.totalorder %v360_v35, %v925_v33  ;;  %vm399_vm4 = vcmp.eq.s32.totalorder %v361_v36, %v925_v33  ;;  %vm396_vm7 = vcmp.eq.s32.totalorder %v360_v35, %v927_v34  ;;  %vm398_vm8 = vcmp.eq.s32.totalorder %v361_v36, %v927_v34 }
  0x33   : > { %685 = vmatpush1.bf16.xpose.msk.msra.mxu0 %vm684_vm14, %v845_v27  ;;  %vm686_vm15 = vmpackc.low %vm395_vm13, %vm393_vm12  ;;  %vm401_vm9 = vcmp.eq.s32.totalorder %v362_v37, %v925_v33  ;;  %vm403_vm10 = vcmp.eq.s32.totalorder %v363_v38, %v925_v33  ;;  %vm400_vm13 = vcmp.eq.s32.totalorder %v362_v37, %v927_v34  ;;  %vm402_vm14 = vcmp.eq.s32.totalorder %v363_v38, %v927_v34 }
  0x34   : > { %687 = vmatprep.subr.msk.bf16.mxu0 %vm686_vm15, %v845_v27  ;;  %vm688_vm5 = vmpackc.low %vm394_vm1, %vm392_vm0  ;;  %vm405_vm15 = vcmp.eq.s32.totalorder %v364_v39, %v925_v33  ;;  %vm407_vm0 = vcmp.eq.s32.totalorder %v365_v40, %v925_v33 }
  0x35   : > { %vm690_vm6 = vmpackc.low %vm399_vm4, %vm397_vm2  ;;  %vm404_vm4 = vcmp.eq.s32.totalorder %v364_v39, %v927_v34 }
  0x36   : > { %vm692_vm11 = vmpackc.low %vm398_vm8, %vm396_vm7  ;;  %vm411_vm7 = vcmp.eq.s32.totalorder %v367_v42, %v925_v33 }
  0x37   : > { %vm694_vm12 = vmpackc.low %vm403_vm10, %vm401_vm9  ;;  %vm408_vm10 = vcmp.eq.s32.totalorder %v366_v41, %v927_v34 }
  0x38   : > { %vm696_vm1 = vmpackc.low %vm402_vm14, %vm400_vm13  ;;  %vm415_vm13 = vcmp.eq.s32.totalorder %v369_v44, %v925_v33 }
  0x39   : > { %vm698_vm2 = vmpackc.low %vm407_vm0, %vm405_vm15  ;;  %vm412_vm0 = vcmp.eq.s32.totalorder %v368_v43, %v927_v34 }
  0x3b   : > { %689 = vmatpush1.bf16.xpose.msk.msra.mxu0 %vm688_vm5, %v845_v27  ;;  %vm406_vm5 = vcmp.eq.s32.totalorder %v365_v40, %v927_v34 }
  0x3c   : > { %691 = vmatprep.subr.msk.bf16.mxu0 %vm690_vm6, %v845_v27  ;;  %vm409_vm6 = vcmp.eq.s32.totalorder %v366_v41, %v925_v33  ;;  %vm700_vm8 = vmpackc.low %vm406_vm5, %vm404_vm4  ;;  %vm419_vm4 = vcmp.eq.s32.totalorder %v371_v46, %v925_v33 }
  0x3d   : > { %vm702_vm9 = vmpackc.low %vm411_vm7, %vm409_vm6  ;;  %vm416_vm7 = vcmp.eq.s32.totalorder %v370_v45, %v927_v34 }
  0x43   : > { %693 = vmatpush1.bf16.xpose.msk.msra.mxu0 %vm692_vm11, %v845_v27  ;;  %vm410_vm11 = vcmp.eq.s32.totalorder %v367_v42, %v927_v34 }
  0x44   : > { %695 = vmatprep.subr.msk.bf16.mxu0 %vm694_vm12, %v845_v27  ;;  %vm413_vm12 = vcmp.eq.s32.totalorder %v368_v43, %v925_v33  ;;  %vm704_vm14 = vmpackc.low %vm410_vm11, %vm408_vm10 }
  0x45   : > { %vm706_vm15 = vmpackc.low %vm415_vm13, %vm413_vm12 }
  0x46   : > { %vm716_vm10 = vmpackc.low %vm916_vm3, %vm916_vm3 }
  0x4b   : > { %697 = vmatpush1.bf16.xpose.msk.msra.mxu0 %vm696_vm1, %v845_v27  ;;  %vm414_vm1 = vcmp.eq.s32.totalorder %v369_v44, %v927_v34 }
  0x4c   : > { %699 = vmatprep.subr.msk.bf16.mxu0 %vm698_vm2, %v845_v27  ;;  %vm417_vm2 = vcmp.eq.s32.totalorder %v370_v45, %v925_v33  ;;  %vm708_vm5 = vmpackc.low %vm414_vm1, %vm412_vm0 }
  0x4d   : > { %vm710_vm6 = vmpackc.low %vm419_vm4, %vm417_vm2 }
  0x53   : > { %701 = vmatpush1.bf16.xpose.msk.msra.mxu0 %vm700_vm8, %v845_v27  ;;  %vm418_vm8 = vcmp.eq.s32.totalorder %v371_v46, %v927_v34 }
  0x54   : > { %703 = vmatprep.subr.msk.bf16.mxu0 %vm702_vm9, %v845_v27  ;;  %vm712_vm9 = vmpackc.low %vm418_vm8, %vm416_vm7 }
  0x5b   : > { %705 = vmatpush1.bf16.xpose.msk.msra.mxu0 %vm704_vm14, %v845_v27 }
  0x5c   : > { %707 = vmatprep.subr.msk.bf16.mxu0 %vm706_vm15, %v845_v27 }
  0x63   : > { %709 = vmatpush1.bf16.xpose.msk.msra.mxu0 %vm708_vm5, %v845_v27 }
  0x64   : > { %711 = vmatprep.subr.msk.bf16.mxu0 %vm710_vm6, %v845_v27 }
  0x6b   : > { %713 = vmatpush1.bf16.xpose.msk.msra.mxu0 %vm712_vm9, %v845_v27 }
  0x72   : > { %717 = vmatmul.mubr.msk.bf16.vlgmr.msra.gmra.mrb[0].mxu0 %vm716_vm10, %v845_v27 }
 0x142   : > { %548 = sbr.rel (%p545_p13) target bundleno = 337 (0x151), region = 36 }
 0x145   : > { %v535_v48 = vpop.f32.mrb[0].mxu0 }
 0x146   : > { %v541_v49 = vadd.f32 %v535_v48, %v500_v47  ;;  %v537_v50 = vpop.f32.mrb[1].mxu0 }
 0x147   : > { %v538_v51 = vpop.f32.mrb[2].mxu0 }
 0x148   : > { %542 = vst [vmem:[#allocation2] sm:$0xff] %v541_v49  ;;  %v539_v52 = vpop.f32.mrb[3].mxu0 }
 0x14f   : > { %v549_v53 = vld [vmem:[#allocation2] sm:$0xff] }
 0x150   : > { %550 = vst [vmem:[#allocation3] sm:$0xff] %v549_v53 }
 0x151 PF: > { %p999_p0 = scmp.eq.s32.totalorder %s637_s14, 3  ;;  %s846_s3 = smov [#allocation3]  }
 0x152   : > { %s560_s4 = sshll.u32 %s846_s3, 4  ;;  %s561_s4 = int_to_ptr.vmem [resolvable:$true] %s560_s4 }
 0x153   : > { %s774_s5 = scalar_lea.vmem %s561_s4, 128  ;;  %p781_p4 = scmp.lt.s32.totalorder %s561_s4, %s561_s4 }
 0x154   : > { %p775_p1 = scmp.ne.s32.totalorder %s561_s4, %s774_s5  ;;  %p782_p5 = scmp.lt.s32.totalorder %s774_s5, %s774_s5 }
 0x156   : > { %p776_p2 = pnand %p775_p1, %p999_p0  ;;  %p783_p6 = por %p782_p5, %p781_p4 }
 0x158   : > { %p777_p3 = pneg %p776_p2 }
 0x15a   : > { %p784_p7 = pnand %p783_p6, %p777_p3 }
 0x15c   : > { %787 = shalt.err (!%p784_p7)
}
 0x15d   : > { %s788_s8 = scalar_lea.hbm %s1042_s2, 128 }
 0x15e   : > { %p789_p8 = scmp.ne.s32.totalorder %s1042_s2, %s788_s8  ;;  %p794_p11 = scmp.lt.u32.totalorder %s788_s8, %s1042_s2 }
 0x160   : > { %p790_p9 = pnand %p789_p8, %p999_p0 }
 0x162   : > { %p791_p10 = pneg %p790_p9 }
 0x164   : > { %p796_p12 = pnand %p794_p11, %p791_p10 }
 0x166   : > { %799 = shalt.err (!%p796_p12)
}
 0x167   : > { %726 = dma.vmem_to_hbm [thread:$0]  (%p999_p0), %s561_s4, 128, %s1042_s2, [#allocation4]  }
 0x168   : > { %821 = dma.done.wait (%p999_p0), [#allocation4], 128  }
 0x169   : > { %823 = vsyncadd (%p999_p0), [#allocation4], 4294967168 }
 0x16a PF: > { %s13_s13 = sadd.s32 1, %s842_s13   ;;  %s1046_s9 = smov %s834_s11 }
 0x16b   : > { %p10_p13 = scmp.ge.s32.totalorder %s13_s13, 6   ;;  %s1047_s10 = smov %s838_s12 }
 0x16c   : > { %s1048_s11 = smov %s1051_s15  ;;  %s1049_s12 = smov %s1055_s16 }
 0x16d   :  { %12 = sbr.rel (!%p10_p13) target bundleno = 3 (0x3), region = 67 }
 0x174   :  { %573 = vsyncpa [#allocation4], 1 }
 0x175   :  { %575 = vsyncpa [#allocation4 + $0x1], 1 }

</bundles_post_ra>
